<compile_context>
chip_gen: v7x
topology: tpu7x:2x2x1
jax: 0.10.0
libtpu: 0.0.40
codegen_flags: <defaults>
</compile_context>

<pallas_src>
import jax
import jax.numpy as jnp
from jax.experimental import pallas as pl
from jax.experimental.pallas import tpu as pltpu


def _round_up(x, m):
    return ((x + m - 1) // m) * m


def _softplus(x):
    # numerically-stable softplus: log(1 + exp(x))
    return jnp.maximum(x, 0.0) + jnp.log1p(jnp.exp(-jnp.abs(x)))


def head_kernel(cls_ids_ref,                      # SMEM (B_pad,) int32 (prefetch)
                emb_hbm,                          # HBM  (V, H) f32
                wp_ref, bp_ref, wc_ref, bc_ref,   # VMEM-resident params
                alpha_ref,                        # out  (TB, CP) bf16
                cls_buf, copy_sem):               # scratch: VMEM (TB,H) f32, DMA sem
    tb = cls_buf.shape[0]
    base = pl.program_id(0) * tb

    # ---- fused gather: DMA the TB CLS-token embedding rows for this tile ----
    def issue(r, carry):
        rid = cls_ids_ref[base + r]
        pltpu.make_async_copy(emb_hbm.at[rid], cls_buf.at[r], copy_sem).start()
        return carry
    jax.lax.fori_loop(0, tb, issue, 0)

    def drain(r, carry):
        # All row copies have identical size, so one wait per issued copy with
        # a same-shaped descriptor drains the semaphore correctly.
        pltpu.make_async_copy(emb_hbm.at[0], cls_buf.at[0], copy_sem).wait()
        return carry
    jax.lax.fori_loop(0, tb, drain, 0)

    # ---- BERT pooler: pooled = tanh(cls @ W_pool + b_pool) ------------------
    cls_bf16 = cls_buf[...].astype(jnp.bfloat16)   # cast in vregs, not via HBM
    pooled = jnp.tanh(
        jnp.dot(cls_bf16, wp_ref[...], preferred_element_type=jnp.float32)
        + bp_ref[...])

    # ---- classifier head (5-way dropout ensemble == identity at inference) --
    logits = (
        jnp.dot(pooled.astype(jnp.bfloat16), wc_ref[...],
                preferred_element_type=jnp.float32)
        + bc_ref[...])

    # ---- alpha = softplus(logits) + 1, lane-dense bf16 slab ------------------
    alpha_ref[...] = (_softplus(logits) + 1.0).astype(alpha_ref.dtype)


def sentence_pair_classifier_head(cls_ids, emb, w_pool, b_pool, w_cls_p,
                                  b_cls_p, num_classes, *, batch_tile=1024):
    """cls_ids: [B] int32 CLS-token ids; returns alpha [B, num_classes] f32."""
    B = cls_ids.shape[0]
    _, H = emb.shape
    CP = w_cls_p.shape[1]

    # 16-row-aligned batch tiles (bf16 output sublane packing). Cap TB so the
    # grid has >=2 steps whenever B allows (v7x megacore); default 1024 rows
    # amortizes the ~0.35us per-grid-step overhead and fits v5e's 16 MiB VMEM.
    ROW = 16
    B_r = max(ROW, _round_up(B, ROW))
    half = max(ROW, (B_r // 2) // ROW * ROW)
    TB = max(ROW, min(batch_tile, half))
    B_pad = _round_up(B_r, TB)

    # Tiny int32 pad of the id vector (padded rows gather row 0; sliced off).
    cls_ids_p = jnp.zeros((B_pad,), jnp.int32).at[:B].set(
        cls_ids.astype(jnp.int32))

    grid = (B_pad // TB,)
    out = pl.pallas_call(
        head_kernel,
        out_shape=jax.ShapeDtypeStruct((B_pad, CP), jnp.bfloat16),
        grid_spec=pltpu.PrefetchScalarGridSpec(
            num_scalar_prefetch=1,                          # cls ids -> SMEM
            grid=grid,
            in_specs=[
                pl.BlockSpec(memory_space=pl.ANY),          # emb stays in HBM
                pl.BlockSpec((H, H), lambda i, ids: (0, 0)),   # VMEM-resident
                pl.BlockSpec((1, H), lambda i, ids: (0, 0)),
                pl.BlockSpec((H, CP), lambda i, ids: (0, 0)),
                pl.BlockSpec((1, CP), lambda i, ids: (0, 0)),
            ],
            out_specs=pl.BlockSpec((TB, CP), lambda i, ids: (i, 0)),
            scratch_shapes=[
                pltpu.VMEM((TB, H), jnp.float32),           # gathered CLS rows
                pltpu.SemaphoreType.DMA,                    # gather completion
            ],
        ),
        compiler_params=pltpu.CompilerParams(
            dimension_semantics=("parallel",),              # shard tiles across TCs
        ),
    )(cls_ids_p, emb, w_pool, b_pool, w_cls_p, b_cls_p)

    return out[:B, :num_classes].astype(jnp.float32)


def prepare_params(raw):
    """One-time parameter preprocessing (hoisted out of the per-call path)."""
    H = raw["w_pool"].shape[0]
    C = raw["w_cls"].shape[1]
    CP = _round_up(C, 128)                        # lane-dense head width
    w_cls_p = jnp.zeros((H, CP), jnp.bfloat16).at[:, :C].set(
        raw["w_cls"].astype(jnp.bfloat16))
    b_cls_p = jnp.zeros((1, CP), jnp.float32).at[:, :C].set(
        raw["b_cls"].reshape(1, C).astype(jnp.float32))
    return {
        "emb": raw["emb"].astype(jnp.float32),    # pooler input stays f32 in HBM
        "w_pool": raw["w_pool"].astype(jnp.bfloat16),
        "b_pool": raw["b_pool"].reshape(1, H).astype(jnp.float32),
        "w_cls_p": w_cls_p,
        "b_cls_p": b_cls_p,
        "num_classes": C,
    }


def forward(prepped, q_ids, q_mask, label=None):
    """SentencePairClassifier.forward(q_ids, q_mask, label) -> alpha."""
    # TODO(synk): the pretrained BERT transformer encoder is not reproduced;
    # a deterministic CLS-token embedding lookup stands in for pooler input.
    del q_mask, label              # consumed only inside the (untranslated) encoder
    cls_ids = q_ids[:, 0]
    return sentence_pair_classifier_head(
        cls_ids, prepped["emb"], prepped["w_pool"], prepped["b_pool"],
        prepped["w_cls_p"], prepped["b_cls_p"], prepped["num_classes"])


def init_params(key, vocab=64, hidden=128, num_classes=2):
    k0, k1, k2, k3, k4 = jax.random.split(key, 5)
    return {
        "emb":    jax.random.normal(k0, (vocab, hidden), jnp.float32) * 0.02,
        "w_pool": jax.random.normal(k1, (hidden, hidden), jnp.float32) * 0.02,
        "b_pool": jax.random.normal(k2, (1, hidden), jnp.float32) * 0.02,
        "w_cls":  jax.random.normal(k3, (hidden, num_classes), jnp.float32) * 0.02,
        "b_cls":  jax.random.normal(k4, (1, num_classes), jnp.float32) * 0.02,
    }


if __name__ == "__main__":
    key = jax.random.PRNGKey(0)
    B, S, H, C, V = 2, 8, 128, 2, 64

    raw = init_params(key, vocab=V, hidden=H, num_classes=C)
    prepped = prepare_params(raw)          # one-time weight prep (hoisted)

    kid, _ = jax.random.split(jax.random.fold_in(key, 1))
    q_ids = jax.random.randint(kid, (B, S), 0, V, dtype=jnp.int32)
    q_mask = jnp.ones((B, S), dtype=jnp.int32)

    alpha = forward(prepped, q_ids, q_mask)
    alpha = jax.block_until_ready(alpha)

    # sanity: alpha = softplus(logits) + 1 must be strictly > 1
    assert alpha.shape == (B, C)
    assert bool(jnp.all(alpha > 1.0))

    # cross-check against a pure-JAX f32 reference of the pooler + head
    cls_ref = raw["emb"][q_ids[:, 0]]
    pooled_ref = jnp.tanh(cls_ref @ raw["w_pool"] + raw["b_pool"])
    logits_ref = pooled_ref @ raw["w_cls"] + raw["b_cls"]
    alpha_ref = (jnp.maximum(logits_ref, 0.0)
                 + jnp.log1p(jnp.exp(-jnp.abs(logits_ref))) + 1.0)
    assert bool(jnp.allclose(alpha, alpha_ref, atol=5e-2, rtol=5e-2))

    print("KERNEL_OK")
</pallas_src>

<mosaic_0001>
module attributes {stable_mosaic.version = 11 : i64} {
  func.func @head_kernel(%arg0: i32, %arg1: memref<16xi32, #tpu.memory_space<smem>>, %arg2: memref<64x128xf32, #tpu.memory_space<any>>, %arg3: memref<128x128xbf16, #tpu.memory_space<vmem>>, %arg4: memref<1x128xf32, #tpu.memory_space<vmem>>, %arg5: memref<128x128xbf16, #tpu.memory_space<vmem>>, %arg6: memref<1x128xf32, #tpu.memory_space<vmem>>, %arg7: memref<16x128xbf16, #tpu.memory_space<vmem>>, %arg8: memref<16x128xf32, #tpu.memory_space<vmem>>, %arg9: memref<!tpu.dma_semaphore, #tpu.memory_space<semaphore_mem>>) attributes {dimension_semantics = [#tpu.dimension_semantics<parallel>], iteration_bounds = array<i64: 1>, scalar_prefetch = 1 : i64, scratch_operands = 2 : i64, tpu.core_type = #tpu.core_type<tc>, window_params = [{}, {pipeline_mode = #tpu.pipeline_mode<synchronous>, transform_indices = @transform_1, window_bounds = array<i64: 128, 128>}, {pipeline_mode = #tpu.pipeline_mode<synchronous>, transform_indices = @transform_2, window_bounds = array<i64: 1, 128>}, {pipeline_mode = #tpu.pipeline_mode<synchronous>, transform_indices = @transform_3, window_bounds = array<i64: 128, 128>}, {pipeline_mode = #tpu.pipeline_mode<synchronous>, transform_indices = @transform_4, window_bounds = array<i64: 1, 128>}, {transform_indices = @transform_5, window_bounds = array<i64: 16, 128>}]} {
    %c16_i32 = arith.constant 16 : i32
    %0 = arith.muli %arg0, %c16_i32 : i32
    %c0_i32 = arith.constant 0 : i32
    %c16_i32_0 = arith.constant 16 : i32
    %1 = arith.addi %c0_i32, %c16_i32_0 : i32
    %c1_i32 = arith.constant 1 : i32
    scf.for %arg10 = %c0_i32 to %1 step %c1_i32  : i32 {
      %29 = arith.addi %0, %arg10 : i32
      %30 = arith.index_cast %29 : i32 to index
      %31 = memref.load %arg1[%30] : memref<16xi32, #tpu.memory_space<smem>>
      %c0_i32_20 = arith.constant 0 : i32
      %32 = tpu.memref_slice %arg2[%31, %c0_i32_20] : memref<64x128xf32, #tpu.memory_space<any>> -> memref<1x128xf32, #tpu.memory_space<any>>
      %33 = tpu.memref_squeeze %32 : memref<1x128xf32, #tpu.memory_space<any>> -> memref<128xf32, #tpu.memory_space<any>>
      %c0_i32_21 = arith.constant 0 : i32
      %34 = tpu.memref_slice %arg8[%arg10, %c0_i32_21] : memref<16x128xf32, #tpu.memory_space<vmem>> -> memref<1x128xf32, #tpu.memory_space<vmem>>
      %35 = tpu.memref_squeeze %34 : memref<1x128xf32, #tpu.memory_space<vmem>> -> memref<128xf32, #tpu.memory_space<vmem>>
      tpu.enqueue_dma source(%33 : memref<128xf32, #tpu.memory_space<any>>) target(%35 : memref<128xf32, #tpu.memory_space<vmem>>) target_semaphore(%arg9 : memref<!tpu.dma_semaphore, #tpu.memory_space<semaphore_mem>>)
    }
    %c16_i32_1 = arith.constant 16 : i32
    %c0_i32_2 = arith.constant 0 : i32
    %c16_i32_3 = arith.constant 16 : i32
    %2 = arith.addi %c0_i32_2, %c16_i32_3 : i32
    %c1_i32_4 = arith.constant 1 : i32
    scf.for %arg10 = %c0_i32_2 to %2 step %c1_i32_4  : i32 {
      %c0_i32_20 = arith.constant 0 : i32
      %c0_i32_21 = arith.constant 0 : i32
      %c0_i32_22 = arith.constant 0 : i32
      %29 = tpu.memref_slice %arg2[%c0_i32_20, %c0_i32_22] : memref<64x128xf32, #tpu.memory_space<any>> -> memref<1x128xf32, #tpu.memory_space<any>>
      %30 = tpu.memref_squeeze %29 : memref<1x128xf32, #tpu.memory_space<any>> -> memref<128xf32, #tpu.memory_space<any>>
      %c0_i32_23 = arith.constant 0 : i32
      %31 = tpu.memref_slice %arg8[%c0_i32_21, %c0_i32_23] : memref<16x128xf32, #tpu.memory_space<vmem>> -> memref<1x128xf32, #tpu.memory_space<vmem>>
      %32 = tpu.memref_squeeze %31 : memref<1x128xf32, #tpu.memory_space<vmem>> -> memref<128xf32, #tpu.memory_space<vmem>>
      tpu.wait_dma2 semaphore(%arg9 : memref<!tpu.dma_semaphore, #tpu.memory_space<semaphore_mem>>) src(%30 : memref<128xf32, #tpu.memory_space<any>>) dst(%32 : memref<128xf32, #tpu.memory_space<vmem>>)
    }
    %c0 = arith.constant 0 : index
    %c0_5 = arith.constant 0 : index
    %3 = vector.load %arg8[%c0, %c0_5] : memref<16x128xf32, #tpu.memory_space<vmem>>, vector<16x128xf32>
    %4 = arith.truncf %3 : vector<16x128xf32> to vector<16x128xbf16>
    %c0_6 = arith.constant 0 : index
    %c0_7 = arith.constant 0 : index
    %5 = vector.load %arg3[%c0_6, %c0_7] : memref<128x128xbf16, #tpu.memory_space<vmem>>, vector<128x128xbf16>
    %cst = arith.constant dense<0.000000e+00> : vector<16x128xf32>
    %6 = tpu.matmul %4, %5, %cst {dimension_numbers = #tpu.dot_dimension_numbers<[1], [0], [0], [1], [0, 0, 1, 1], [], []>} : vector<16x128xbf16>, vector<128x128xbf16>, vector<16x128xf32> -> vector<16x128xf32>
    %c0_8 = arith.constant 0 : index
    %c0_9 = arith.constant 0 : index
    %7 = vector.load %arg4[%c0_8, %c0_9] : memref<1x128xf32, #tpu.memory_space<vmem>>, vector<1x128xf32>
    %8 = vector.broadcast %7 : vector<1x128xf32> to vector<16x128xf32>
    %9 = arith.addf %6, %8 : vector<16x128xf32>
    %10 = math.tanh %9 : vector<16x128xf32>
    %11 = arith.truncf %10 : vector<16x128xf32> to vector<16x128xbf16>
    %c0_10 = arith.constant 0 : index
    %c0_11 = arith.constant 0 : index
    %12 = vector.load %arg5[%c0_10, %c0_11] : memref<128x128xbf16, #tpu.memory_space<vmem>>, vector<128x128xbf16>
    %cst_12 = arith.constant dense<0.000000e+00> : vector<16x128xf32>
    %13 = tpu.matmul %11, %12, %cst_12 {dimension_numbers = #tpu.dot_dimension_numbers<[1], [0], [0], [1], [0, 0, 1, 1], [], []>} : vector<16x128xbf16>, vector<128x128xbf16>, vector<16x128xf32> -> vector<16x128xf32>
    %c0_13 = arith.constant 0 : index
    %c0_14 = arith.constant 0 : index
    %14 = vector.load %arg6[%c0_13, %c0_14] : memref<1x128xf32, #tpu.memory_space<vmem>>, vector<1x128xf32>
    %15 = vector.broadcast %14 : vector<1x128xf32> to vector<16x128xf32>
    %16 = arith.addf %13, %15 : vector<16x128xf32>
    %cst_15 = arith.constant 0.000000e+00 : f32
    %17 = vector.broadcast %cst_15 : f32 to vector<16x128xf32>
    %18 = arith.maximumf %16, %17 : vector<16x128xf32>
    %19 = math.absf %16 : vector<16x128xf32>
    %cst_16 = arith.constant 0.000000e+00 : f32
    %20 = vector.broadcast %cst_16 : f32 to vector<16x128xf32>
    %21 = arith.subf %20, %19 : vector<16x128xf32>
    %22 = math.exp %21 : vector<16x128xf32>
    %23 = math.log1p %22 : vector<16x128xf32>
    %24 = arith.addf %18, %23 : vector<16x128xf32>
    %cst_17 = arith.constant 1.000000e+00 : f32
    %25 = vector.broadcast %cst_17 : f32 to vector<16x128xf32>
    %26 = arith.addf %24, %25 : vector<16x128xf32>
    %27 = arith.truncf %26 : vector<16x128xf32> to vector<16x128xbf16>
    %c0_18 = arith.constant 0 : index
    %c0_19 = arith.constant 0 : index
    %28 = vector.load %arg7[%c0_18, %c0_19] : memref<16x128xbf16, #tpu.memory_space<vmem>>, vector<16x128xbf16>
    tpu.vector_store %arg7[%c0_18, %c0_19], %27 {strides = array<i32>} : memref<16x128xbf16, #tpu.memory_space<vmem>>, vector<16x128xbf16>,
    return
  }
  func.func @transform_1(%arg0: i32, %arg1: memref<16xi32, #tpu.memory_space<smem>>) -> (i32, i32) {
    %c0_i32 = arith.constant 0 : i32
    %c0_i32_0 = arith.constant 0 : i32
    %c0_i32_1 = arith.constant 0 : i32
    return %c0_i32, %c0_i32_0 : i32, i32
  }
  func.func @transform_2(%arg0: i32, %arg1: memref<16xi32, #tpu.memory_space<smem>>) -> (i32, i32) {
    %c0_i32 = arith.constant 0 : i32
    %c0_i32_0 = arith.constant 0 : i32
    %c0_i32_1 = arith.constant 0 : i32
    return %c0_i32, %c0_i32_0 : i32, i32
  }
  func.func @transform_3(%arg0: i32, %arg1: memref<16xi32, #tpu.memory_space<smem>>) -> (i32, i32) {
    %c0_i32 = arith.constant 0 : i32
    %c0_i32_0 = arith.constant 0 : i32
    %c0_i32_1 = arith.constant 0 : i32
    return %c0_i32, %c0_i32_0 : i32, i32
  }
  func.func @transform_4(%arg0: i32, %arg1: memref<16xi32, #tpu.memory_space<smem>>) -> (i32, i32) {
    %c0_i32 = arith.constant 0 : i32
    %c0_i32_0 = arith.constant 0 : i32
    %c0_i32_1 = arith.constant 0 : i32
    return %c0_i32, %c0_i32_0 : i32, i32
  }
  func.func @transform_5(%arg0: i32, %arg1: memref<16xi32, #tpu.memory_space<smem>>) -> (i32, i32) {
    %c0_i32 = arith.constant 0 : i32
    %c0_i32_0 = arith.constant 0 : i32
    return %arg0, %c0_i32 : i32, i32
  }
}

</mosaic_0001>

<bundles_post_ra>
// kernel: tpu_custom_call.1
= control target key start
LH: loop header
LB: loop body
LE: loop exit
PB: predicated region body
PF: predicated region fallthrough
CT: control target
= control target key end

     0   :  { %s784_s0 = inlined_call_operand.hbm [shape: s32[16], index: 0, kind: input, shape index: {}]   ;;  %s785_s1 = inlined_call_operand.hbm [shape: f32[64,128], index: 1, kind: input, shape index: {}]   ;;  %s786_s2 = inlined_call_operand.hbm [shape: bf16[128,128], index: 2, kind: input, shape index: {}]   ;;  %s787_s3 = inlined_call_operand.vmem [shape: f32[1,128], index: 3, kind: input, shape index: {}]   ;;  %s788_s4 = inlined_call_operand.hbm [shape: bf16[128,128], index: 4, kind: input, shape index: {}]   ;;  %s789_s5 = inlined_call_operand.vmem [shape: f32[1,128], index: 5, kind: input, shape index: {}]   ;;  %s790_s6 = inlined_call_operand.hbm [shape: bf16[16,128], index: 6, kind: output, shape index: {}]  }
   0x1   :  { %s532_s23 = scalar_lea.hbm %s784_s0, 16 }
   0x2   :  { %p533_p0 = scmp.ne.s32.totalorder %s784_s0, %s532_s23  ;;  %p536_p1 = scmp.lt.u32.totalorder %s532_s23, %s784_s0 }
   0x4   :  { %p538_p2 = pnand %p536_p1, %p533_p0 }
   0x6   :  { %541 = shalt.err (!%p538_p2)  }
   0x7   :  { %s658_s28 = smov [#allocation5]  }
   0x8   :  { %12 = dma.hbm_to_smem %s784_s0, 16, %s658_s28, [#allocation4] }
   0x9   :  { %640 = dma.done.wait [#allocation4], 16 }
   0xa   :  { %641 = vsyncadd [#allocation4], 4294967280 }
   0xb   :  { %14 = sfence }
   0xc   :  { %15 = vsyncpa [#allocation7], 0 }
   0xd   :  { %16 = vsyncpa [#allocation10], 0 }
   0xe   :  { %17 = vsyncpa [#allocation8], 0  ;;  %s659_s7 = smov [#allocation6]   ;;  %s542_s11 = scalar_lea.hbm %s786_s2, 1024 }
   0xf   :  { %s23_s8 = sshll.u32 %s659_s7, 4  ;;  %p543_p3 = scmp.ne.s32.totalorder %s786_s2, %s542_s11  ;;  %s24_s8 = int_to_ptr.vmem [resolvable:$true] %s23_s8 }
  0x10   :  { %p546_p4 = scmp.lt.u32.totalorder %s542_s11, %s786_s2 }
  0x12   :  { %p548_p5 = pnand %p546_p4, %p543_p3 }
  0x14   :  { %551 = shalt.err (!%p548_p5)
}
  0x15   :  { %s552_s0 = scalar_lea.vmem %s24_s8, 1024  ;;  %p557_p7 = scmp.lt.s32.totalorder %s24_s8, %s24_s8 }
  0x16   :  { %p553_p6 = scmp.ne.s32.totalorder %s24_s8, %s552_s0  ;;  %p558_p8 = scmp.lt.s32.totalorder %s552_s0, %s552_s0 }
  0x18   :  { %p559_p9 = por %p558_p8, %p557_p7 }
  0x1a   :  { %p560_p10 = pnand %p559_p9, %p553_p6 }
  0x1c   :  { %563 = shalt.err (!%p560_p10)
}
  0x1d   :  { %s660_s16 = smov 64   ;;  %s661_s17 = smov 4  }
  0x1e   :  { %29 = dma.hbm_to_vmem [thread:$0]  %s786_s2, 1024, %s24_s8, [#allocation7], %s660_s16, %s660_s16, %s661_s17  }
  0x1f   :  { %s662_s20 = smov [#allocation9]   ;;  %s564_s24 = scalar_lea.hbm %s788_s4, 1024 }
  0x20   :  { %s37_s21 = sshll.u32 %s662_s20, 4  ;;  %p565_p11 = scmp.ne.s32.totalorder %s788_s4, %s564_s24  ;;  %s38_s21 = int_to_ptr.vmem [resolvable:$true] %s37_s21 }
  0x21   :  { %p568_p12 = scmp.lt.u32.totalorder %s564_s24, %s788_s4 }
  0x23   :  { %p570_p13 = pnand %p568_p12, %p565_p11 }
  0x25   :  { %573 = shalt.err (!%p570_p13)
}
  0x26   :  { %s574_s29 = scalar_lea.vmem %s38_s21, 1024  ;;  %p579_p1 = scmp.lt.s32.totalorder %s38_s21, %s38_s21 }
  0x27   :  { %p575_p0 = scmp.ne.s32.totalorder %s38_s21, %s574_s29  ;;  %p580_p2 = scmp.lt.s32.totalorder %s574_s29, %s574_s29 }
  0x29   :  { %p581_p3 = por %p580_p2, %p579_p1 }
  0x2b   :  { %p582_p4 = pnand %p581_p3, %p575_p0 }
  0x2d   :  { %585 = shalt.err (!%p582_p4)
}
  0x2e   :  { %43 = dma.hbm_to_vmem [thread:$0]  %s788_s4, 1024, %s38_s21, [#allocation10], %s660_s16, %s660_s16, %s661_s17  }
  0x2f   :  { %642 = dma.done.wait [#allocation7], 1024  }
  0x30   :  { %643 = vsyncadd [#allocation7], 4294966272 }
  0x31   :  { %644 = dma.done.wait [#allocation10], 1024  }
  0x32   :  { %645 = vsyncadd [#allocation10], 4294966272  ;;  %s744_s7 = smov 0  }
  0x33 LB: > { %s61_s8 = sld [smem:[#allocation5 + %s652_s7]]  ;;  %s64_s9 = scalar_lea.vmem [#allocation2], %s652_s7  ;;  %s652_s7 = sphi %s744_s7, %s59_s7  }
  0x34   : > { %s72_s10 = sshll.u32 %s64_s9, 4  ;;  %s588_s18 = scalar_lea.hbm %s785_s1, 1024  ;;  %s73_s10 = int_to_ptr.vmem [resolvable:$true] %s72_s10 }
  0x39   : > { %s393_s11 = sshll.u32 %s61_s8, 4 }
  0x3a   : > { %s63_s13 = scalar_lea.hbm %s785_s1, %s393_s11 }
  0x3b   : > { %s586_s14 = scalar_lea.hbm %s63_s13, 16  ;;  %p589_p6 = scmp.lt.u32.totalorder %s63_s13, %s785_s1 }
  0x3c   : > { %p587_p5 = scmp.ne.s32.totalorder %s63_s13, %s586_s14  ;;  %p590_p7 = scmp.lt.u32.totalorder %s588_s18, %s586_s14 }
  0x3d   : > { %p592_p9 = scmp.lt.u32.totalorder %s586_s14, %s63_s13 }
  0x3e   : > { %p591_p8 = por %p590_p7, %p589_p6 }
  0x40   : > { %p593_p10 = por %p592_p9, %p591_p8 }
  0x42   : > { %p594_p11 = pnand %p593_p10, %p587_p5 }
  0x44   : > { %597 = shalt.err (!%p594_p11)  }
  0x45   : > { %s598_s21 = scalar_lea.vmem %s73_s10, 16  ;;  %s663_s22 = smov [#allocation2]  }
  0x46   : > { %p599_p12 = scmp.ne.s32.totalorder %s73_s10, %s598_s21  ;;  %s600_s23 = sshll.u32 %s663_s22, 4  ;;  %s601_s23 = int_to_ptr.vmem [resolvable:$false] %s600_s23 }
  0x47   : > { %s602_s24 = scalar_lea.vmem %s601_s23, 256  ;;  %p603_p13 = scmp.lt.s32.totalorder %s73_s10, %s601_s23 }
  0x48   : > { %p604_p0 = scmp.lt.s32.totalorder %s602_s24, %s598_s21 }
  0x4a   : > { %p605_p1 = por %p604_p0, %p603_p13 }
  0x4c   : > { %p606_p2 = pnand %p605_p1, %p599_p12 }
  0x4e   : > { %609 = shalt.err (!%p606_p2)  }
  0x4f   : > { %75 = dma.hbm_to_vmem [thread:$0]  %s63_s13, 16, %s73_s10, [#allocation3] }
  0x50   : > { %s59_s7 = sadd.s32 1, %s652_s7  }
  0x51   : > { %p56_p3 = scmp.ge.s32.totalorder %s59_s7, 16  }
  0x52   :  { %s654_s25 = smov (%p56_p3), 0  }
  0x53   :  { %58 = sbr.rel (!%p56_p3) target bundleno = 51 (0x33), region = 64 }
  0x5a LB: > { %646 = dma.done.wait [#allocation3], 16  ;;  %s656_s25 = sphi %s654_s25, %s81_s25  }
  0x5b   : > { %647 = vsyncadd [#allocation3], 4294967280  ;;  %s81_s25 = sadd.s32 1, %s656_s25  }
  0x5c   : > { %p78_p4 = scmp.ge.s32.totalorder %s81_s25, 16  }
  0x5d   :  { %v504_v0 = vld [vmem:[#allocation6] sm:$0xff] (%p78_p4)   ;;  %v664_v1 = vmov (%p78_p4), 0.0   ;;  %v505_v2 = vld [vmem:[#allocation6 + $0x8] sm:$0xff] (%p78_p4)   ;;  %vm665_vm0 = vmmov (%p78_p4), 0   ;;  %v506_v3 = vld [vmem:[#allocation6 + $0x10] sm:$0xff] (%p78_p4)  }
  0x5e   :  { %80 = sbr.rel (!%p78_p4) target bundleno = 90 (0x5a), region = 75  ;;  %440 = vmatprep.subr.bf16.mxu0 (%p78_p4), %v664_v1  ;;  %460 = vmatprep.subr.bf16.mxu1 (%p78_p4), %v664_v1  ;;  %v512_v4 = vld [vmem:[#allocation9] sm:$0xff] (%p78_p4)   ;;  %v507_v5 = vld [vmem:[#allocation6 + $0x18] sm:$0xff] (%p78_p4)   ;;  %v513_v6 = vld [vmem:[#allocation9 + $0x8] sm:$0xff] (%p78_p4)  }
  0x5f   :  { %441 = vmatpush3.bf16.msra.mxu0 (%p78_p4), %v504_v0  ;;  %456 = vmatprep.mubr.msk.bf16.mxu0 (%p78_p4), %vm665_vm0, %v664_v1  ;;  %v508_v7 = vld [vmem:[#allocation6 + $0x20] sm:$0xff] (%p78_p4)   ;;  %v514_v8 = vld [vmem:[#allocation9 + $0x10] sm:$0xff] (%p78_p4)   ;;  %v509_v9 = vld [vmem:[#allocation6 + $0x28] sm:$0xff] (%p78_p4)  }
  0x60   :  { %442 = vmatprep.subr.bf16.mxu0 (%p78_p4), %v664_v1  ;;  %476 = vmatprep.mubr.msk.bf16.mxu1 (%p78_p4), %vm665_vm0, %v664_v1  ;;  %v515_v10 = vld [vmem:[#allocation9 + $0x18] sm:$0xff] (%p78_p4)   ;;  %v510_v11 = vld [vmem:[#allocation6 + $0x30] sm:$0xff] (%p78_p4)   ;;  %v516_v16 = vld [vmem:[#allocation9 + $0x20] sm:$0xff] (%p78_p4)  }
  0x61   :  { %461 = vmatpush3.bf16.msra.mxu1 (%p78_p4), %v512_v4  ;;  %v511_v12 = vld [vmem:[#allocation6 + $0x38] sm:$0xff] (%p78_p4)   ;;  %v84_v13 = vld [vmem:[#allocation2] sm:$0xff] (%p78_p4)  ;;  %v517_v17 = vld [vmem:[#allocation9 + $0x28] sm:$0xff] (%p78_p4)  }
  0x62   :  { %462 = vmatprep.subr.bf16.mxu1 (%p78_p4), %v664_v1  ;;  %v85_v14 = vld [vmem:[#allocation2 + $0x8] sm:$0xff] (%p78_p4)  ;;  %v518_v18 = vld [vmem:[#allocation9 + $0x30] sm:$0xff] (%p78_p4)  }
  0x63   :  { %443 = vmatpush3.bf16.msra.mxu0 (%p78_p4), %v505_v2  ;;  %v86_v15 = vpack.c.bf16 (%p78_p4), %v85_v14, %v84_v13  ;;  %v519_v19 = vld [vmem:[#allocation9 + $0x38] sm:$0xff] (%p78_p4)   ;;  %v394_v20 = vld [vmem:[%s787_s3] ss:$0 sm:$0xff] (%p78_p4)  ;;  %s666_s3 = smov (%p78_p4), [#allocation11]  }
  0x64   :  { %444 = vmatprep.subr.bf16.mxu0 (%p78_p4), %v664_v1  ;;  %v403_v30 = vld [vmem:[%s789_s5] ss:$0 sm:$0xff] (%p78_p4)  ;;  %s361_s5 = sshll.u32 (%p78_p4), %s666_s3, 4  ;;  %s362_s5 = int_to_ptr.vmem [resolvable:$true] %s361_s5 }
  0x65   :  { %463 = vmatpush3.bf16.msra.mxu1 %v513_v6  ;;  %s610_s29 = scalar_lea.vmem %s362_s5, 128  ;;  %p615_p6 = scmp.lt.s32.totalorder %s362_s5, %s362_s5 }
  0x66   :  { %464 = vmatprep.subr.bf16.mxu1 %v664_v1  ;;  %p611_p5 = scmp.ne.s32.totalorder %s362_s5, %s610_s29  ;;  %p616_p7 = scmp.lt.s32.totalorder %s610_s29, %s610_s29 }
  0x67   :  { %445 = vmatpush3.bf16.msra.mxu0 %v506_v3 }
  0x68   :  { %446 = vmatprep.subr.bf16.mxu0 %v664_v1  ;;  %p617_p8 = por %p616_p7, %p615_p6 }
  0x69   :  { %465 = vmatpush3.bf16.msra.mxu1 %v514_v8 }
  0x6a   :  { %466 = vmatprep.subr.bf16.mxu1 %v664_v1  ;;  %p618_p9 = pnand %p617_p8, %p611_p5 }
  0x6b   :  { %447 = vmatpush3.bf16.msra.mxu0 %v507_v5 }
  0x6c   :  { %448 = vmatprep.subr.bf16.mxu0 %v664_v1 }
  0x6d   :  { %467 = vmatpush3.bf16.msra.mxu1 %v515_v10 }
  0x6e   :  { %468 = vmatprep.subr.bf16.mxu1 %v664_v1 }
  0x6f   :  { %449 = vmatpush3.bf16.msra.mxu0 %v508_v7 }
  0x70   :  { %450 = vmatprep.subr.bf16.mxu0 %v664_v1 }
  0x71   :  { %469 = vmatpush3.bf16.msra.mxu1 %v516_v16 }
  0x72   :  { %470 = vmatprep.subr.bf16.mxu1 %v664_v1 }
  0x73   :  { %451 = vmatpush3.bf16.msra.mxu0 %v509_v9 }
  0x74   :  { %452 = vmatprep.subr.bf16.mxu0 %v664_v1 }
  0x75   :  { %471 = vmatpush3.bf16.msra.mxu1 %v517_v17 }
  0x76   :  { %472 = vmatprep.subr.bf16.mxu1 %v664_v1 }
  0x77   :  { %453 = vmatpush3.bf16.msra.mxu0 %v510_v11 }
  0x78   :  { %454 = vmatprep.subr.bf16.mxu0 %v664_v1 }
  0x79   :  { %473 = vmatpush3.bf16.msra.mxu1 %v518_v18 }
  0x7a   :  { %474 = vmatprep.subr.bf16.mxu1 %v664_v1 }
  0x7b   :  { %455 = vmatpush3.bf16.msra.mxu0 %v511_v12 }
  0x7d   :  { %475 = vmatpush3.bf16.msra.mxu1 %v519_v19 }
  0x7e   :  { %457 = vmatmul.mubr.bf16.vlgmr.msra.gmra.mrb[0].mxu0 %v86_v15 }
 0x151   :  { %v192_v21 = vpop.f32.mrb[0].mxu0 }
 0x152   :  { %v193_v22 = vadd.f32 %v394_v20, %v192_v21  ;;  %v458_v23 = vpop.f32.mrb[1].mxu0 }
 0x153   :  { %v195_v24 = vpop.f32.mrb[2].mxu0 }
 0x154   :  { %v196_v25 = vadd.f32 %v394_v20, %v195_v24  ;;  %v459_v26 = vpop.f32.mrb[3].mxu0  ;;  %520 = vtanh.f32 %v193_v22 }
 0x156   :  { %522 = vtanh.f32 %v196_v25 }
 0x15e   :  { %v521_v27 = vpop.eup %520 }
 0x160   :  { %v523_v28 = vpop.eup %522 }
 0x161   :  { %v201_v29 = vpack.c.bf16 %v523_v28, %v521_v27 }
 0x163   :  { %477 = vmatmul.mubr.bf16.vlgmr.msra.gmra.mrb[0].mxu1 %v201_v29 }
 0x236   :  { %v307_v31 = vpop.f32.mrb[0].mxu1 }
 0x237   :  { %v308_v32 = vadd.f32 %v403_v30, %v307_v31  ;;  %v478_v33 = vpop.f32.mrb[1].mxu1 }
 0x238   :  { %v310_v34 = vpop.f32.mrb[2].mxu1 }
 0x239   :  { %v316_v35 = vand.u32 2147483647, %v308_v32  ;;  %v311_v36 = vadd.f32 %v403_v30, %v310_v34  ;;  %v479_v37 = vpop.f32.mrb[3].mxu1  ;;  %v314_v57 = vmax.f32 %v308_v32, 0.0 }
 0x23b   :  { %v318_v38 = vsub.f32 0.0, %v316_v35  ;;  %v317_v39 = vand.u32 2147483647, %v311_v36  ;;  %v315_v61 = vmax.f32 %v311_v36, 0.0 }
 0x23d   :  { %v320_v40 = vmul.f32 1.442695, %v318_v38  ;;  %v319_v41 = vsub.f32 0.0, %v317_v39 }
 0x23f   :  { %524 = vpow2.f32 %v320_v40  ;;  %v322_v42 = vmul.f32 1.442695, %v319_v41 }
 0x241   :  { %526 = vpow2.f32 %v322_v42 }
 0x249   :  { %v525_v43 = vpop.eup %524 }
 0x24a   :  { %v324_v44 = vadd.f32 1.0, %v525_v43  ;;  %v327_v47 = vmul.f32 -0.5, %v525_v43  ;;  %v330_v50 = vand.u32 2147483647, %v525_v43 }
 0x24b   :  { %v527_v45 = vpop.eup %526 }
 0x24c   :  { %528 = vlog2.f32 %v324_v44  ;;  %v333_v46 = vadd.f32 1.0, %v527_v45  ;;  %v336_v48 = vmul.f32 -0.5, %v527_v45  ;;  %v328_v49 = vadd.f32 1.0, %v327_v47 }
 0x24d   :  { %v339_v53 = vand.u32 2147483647, %v527_v45  ;;  %vm331_vm1 = vcmp.lt.f32.partialorder %v330_v50, 0.0004427343 }
 0x24e   :  { %530 = vlog2.f32 %v333_v46  ;;  %v337_v51 = vadd.f32 1.0, %v336_v48  ;;  %v329_v55 = vmul.f32 %v525_v43, %v328_v49 }
 0x24f   :  { %vm340_vm2 = vcmp.lt.f32.partialorder %v339_v53, 0.0004427343 }
 0x250   :  { %v338_v60 = vmul.f32 %v527_v45, %v337_v51 }
 0x256   :  { %v529_v52 = vpop.eup %528 }
 0x257   :  { %v326_v54 = vmul.f32 0.6931472, %v529_v52 }
 0x258   :  { %v531_v56 = vpop.eup %530 }
 0x259   :  { %v332_v58 = vsel %vm331_vm1, %v329_v55, %v326_v54  ;;  %v335_v59 = vmul.f32 0.6931472, %v531_v56 }
 0x25a   :  { %v342_v62 = vadd.f32 %v332_v58, %v314_v57 }
 0x25b   :  { %v341_v63 = vsel %vm340_vm2, %v338_v60, %v335_v59 }
 0x25c   :  { %v343_v0 = vadd.f32 %v341_v63, %v315_v61  ;;  %v344_v1 = vadd.f32 1.0, %v342_v62 }
 0x25e   :  { %v345_v2 = vadd.f32 1.0, %v343_v0 }
 0x260   :  { %v420_v3 = vpack.c.bf16 %v345_v2, %v344_v1 }
 0x262   :  { %421 = vst [vmem:[#allocation11] sm:$0xff] %v420_v3  }
 0x263   :  { %621 = shalt.err (!%p618_p9)
}
 0x264   :  { %s622_s7 = scalar_lea.hbm %s790_s6, 128 }
 0x265   :  { %p623_p10 = scmp.ne.s32.totalorder %s790_s6, %s622_s7  ;;  %p626_p11 = scmp.lt.u32.totalorder %s622_s7, %s790_s6 }
 0x267   :  { %p628_p12 = pnand %p626_p11, %p623_p10 }
 0x269   :  { %631 = shalt.err (!%p628_p12)
}
 0x26a   :  { %367 = dma.vmem_to_hbm [thread:$0]  %s362_s5, 128, %s790_s6, [#allocation8], %s660_s16, %s660_s16, %s661_s17  }
 0x26b   :  { %648 = dma.done.wait [#allocation8], 128  }
 0x26c   :  { %649 = vsyncadd [#allocation8], 4294967168 }
 0x26d   :  { %371 = vsyncpa [#allocation7], 1 }
 0x26e   :  { %372 = vsyncpa [#allocation10], 1 }
 0x26f   :  { %373 = vsyncpa [#allocation8], 1 }
 0x270   :  { %374 = vsyncmov [#allocation3] }
 0x273   :  { %s375_s13 = vpop.sfrf %374 }
 0x274   :  { %p414_p13 = scmp.ne.s32.totalorder %s375_s13, 0 }
 0x276   :  { %379 = shalt.err (%p414_p13)  }

</bundles_post_ra>
